<compile_context>
chip_gen: v5e
topology: v5e:2x2
jax: 0.10.0
libtpu: 0.0.40
codegen_flags: <defaults>
</compile_context>

<pallas_src>
import functools

import jax
import jax.numpy as jnp
from jax import lax
from jax.experimental import pallas as pl
from jax.experimental.pallas import tpu as pltpu


def _inverted_residual_kernel(x_ref, w1_ref, b1_ref, wtap_ref, b2_ref,
                              w3_ref, b3_ref, o_ref, *, W, S, use_res):
    """One batch element per grid step; layout (C, H*W) = (sublane, lane)."""
    x = x_ref[0]                                                     # (Cin, S)

    # ---- 1x1 expand conv (BN1 scale pre-folded into w1): MXU ----
    h = jnp.dot(w1_ref[...], x, preferred_element_type=jnp.float32)  # (hidden, S)
    h = jnp.clip(h + b1_ref[...], 0.0, 6.0)                          # bias + ReLU6

    # ---- 3x3 depthwise conv, stride 1, pad 1 (BN2 scale pre-folded) ----
    # wtap_ref[t] = dw_weight[:, t, None] * boundary_mask[t, None, :]
    # (precomputed on host), so each tap is one roll + one FMA.
    acc = h * wtap_ref[4]                                            # center tap
    for dy in (-1, 0, 1):
        for dx in (-1, 0, 1):
            t = 3 * (dy + 1) + (dx + 1)
            if t == 4:
                continue
            k = dy * W + dx
            shifted = pltpu.roll(h, (-k) % S, axis=1)                # h[s + k]
            acc = acc + shifted * wtap_ref[t]
    acc = jnp.clip(acc + b2_ref[...], 0.0, 6.0)                      # bias + ReLU6

    # ---- 1x1 projection conv (BN3 scale pre-folded): MXU ----
    y = jnp.dot(w3_ref[...], acc, preferred_element_type=jnp.float32)  # (Cout, S)
    y = y + b3_ref[...]
    if use_res:                                                      # residual
        y = y + x
    o_ref[0] = y.astype(o_ref.dtype)


def inverted_residual(x_nchw, params, *, stride, use_res):
    assert stride == 1, "only stride=1 implemented in the kernel"
    w1, b1, wdw, b2, w3, b3 = params
    N, Cin, H, W = x_nchw.shape
    hidden = w1.shape[0]
    Cout = w3.shape[0]
    S = H * W

    x = x_nchw.reshape(N, Cin, S)          # free reshape of NCHW (no transpose)

    # Host-side: fold the zero-padding boundary masks into the per-tap
    # depthwise weights -> (9, hidden, S) slab (tiny: ~220 KB at this config).
    ys, xs = jnp.meshgrid(jnp.arange(H), jnp.arange(W), indexing="ij")
    masks = []
    for dy in (-1, 0, 1):
        for dx in (-1, 0, 1):
            valid = ((xs + dx >= 0) & (xs + dx < W)
                     & (ys + dy >= 0) & (ys + dy < H))
            masks.append(valid.reshape(S).astype(jnp.float32))
    mask = jnp.stack(masks)                                 # (9, S)
    wtap = wdw.T[:, :, None] * mask[:, None, :]             # (9, hidden, S)

    kernel = functools.partial(_inverted_residual_kernel,
                               W=W, S=S, use_res=use_res)

    out = pl.pallas_call(
        kernel,
        out_shape=jax.ShapeDtypeStruct((N, Cout, S), x.dtype),
        grid_spec=pltpu.PrefetchScalarGridSpec(
            num_scalar_prefetch=0,
            grid=(N,),
            in_specs=[
                pl.BlockSpec((1, Cin, S), lambda n: (n, 0, 0)),
                pl.BlockSpec((hidden, Cin), lambda n: (0, 0)),
                pl.BlockSpec((hidden, 1), lambda n: (0, 0)),
                pl.BlockSpec((9, hidden, S), lambda n: (0, 0, 0)),
                pl.BlockSpec((hidden, 1), lambda n: (0, 0)),
                pl.BlockSpec((Cout, hidden), lambda n: (0, 0)),
                pl.BlockSpec((Cout, 1), lambda n: (0, 0)),
            ],
            out_specs=pl.BlockSpec((1, Cout, S), lambda n: (n, 0, 0)),
        ),
        compiler_params=pltpu.CompilerParams(
            dimension_semantics=("parallel",)),
    )(x, w1, b1, wtap, b2, w3, b3)

    return out.reshape(N, Cout, H, W)      # free reshape back to NCHW


def _fold_bn(gamma, beta, mean, var, eps=1e-5):
    scale = gamma * lax.rsqrt(var + eps)
    bias = beta - mean * scale
    return scale, bias


def make_params(key, inp, oup, expand_ratio):
    hidden = int(round(inp * expand_ratio))
    ks = jax.random.split(key, 6)
    # PyTorch-layout weights
    w1_pt = 0.2 * jax.random.normal(ks[0], (hidden, inp, 1, 1), jnp.float32)   # 1x1 expand
    wdw_pt = 0.2 * jax.random.normal(ks[1], (hidden, 1, 3, 3), jnp.float32)    # 3x3 depthwise
    w3_pt = 0.2 * jax.random.normal(ks[2], (oup, hidden, 1, 1), jnp.float32)   # 1x1 project

    # eval-mode BatchNorm parameters (deterministic, non-trivial)
    def bn(k, c):
        k1, k2, k3, k4 = jax.random.split(k, 4)
        gamma = 1.0 + 0.1 * jax.random.normal(k1, (c,), jnp.float32)
        beta = 0.1 * jax.random.normal(k2, (c,), jnp.float32)
        mean = 0.1 * jax.random.normal(k3, (c,), jnp.float32)
        var = 0.5 + jax.random.uniform(k4, (c,), jnp.float32)
        return gamma, beta, mean, var

    bn1, bn2, bn3 = bn(ks[3], hidden), bn(ks[4], hidden), bn(ks[5], oup)
    s1, b1 = _fold_bn(*bn1)
    s2, b2 = _fold_bn(*bn2)
    s3, b3 = _fold_bn(*bn3)

    # Kernel-layout weights with BN scales folded in (scale per output channel
    # row); only the biases remain as separate kernel inputs.
    w1 = w1_pt[:, :, 0, 0] * s1[:, None]                    # (hidden, Cin)
    wdw = wdw_pt[:, 0].reshape(hidden, 9) * s2[:, None]     # (hidden, 9), t = 3*(dy+1)+(dx+1)
    w3 = w3_pt[:, :, 0, 0] * s3[:, None]                    # (Cout, hidden)
    kernel_params = (w1, b1[:, None], wdw, b2[:, None], w3, b3[:, None])
    pt_params = (w1_pt, wdw_pt, w3_pt, (s1, b1), (s2, b2), (s3, b3))
    return kernel_params, pt_params, hidden


def reference_forward(x, pt_params, *, stride, use_res, hidden):
    """Pure-JAX NCHW reference mirroring the PyTorch module (eval-mode BN)."""
    w1_pt, wdw_pt, w3_pt, (s1, b1), (s2, b2), (s3, b3) = pt_params
    dn = ("NCHW", "OIHW", "NCHW")
    hp = lax.Precision.HIGHEST
    h = lax.conv_general_dilated(x, w1_pt, (1, 1), "VALID",
                                 dimension_numbers=dn, precision=hp)
    h = h * s1[None, :, None, None] + b1[None, :, None, None]
    h = jnp.clip(h, 0.0, 6.0)
    h = lax.conv_general_dilated(h, wdw_pt, (stride, stride), ((1, 1), (1, 1)),
                                 dimension_numbers=dn,
                                 feature_group_count=hidden, precision=hp)
    h = h * s2[None, :, None, None] + b2[None, :, None, None]
    h = jnp.clip(h, 0.0, 6.0)
    y = lax.conv_general_dilated(h, w3_pt, (1, 1), "VALID",
                                 dimension_numbers=dn, precision=hp)
    y = y * s3[None, :, None, None] + b3[None, :, None, None]
    return x + y if use_res else y


if __name__ == "__main__":
    inp, oup, stride, expand_ratio = 4, 4, 1, 6
    use_res = (stride == 1 and inp == oup)

    key = jax.random.PRNGKey(0)
    kx, kp = jax.random.split(key)
    x = jax.random.normal(kx, (2, inp, 16, 16), jnp.float32)      # NCHW input

    kernel_params, pt_params, hidden = make_params(kp, inp, oup, expand_ratio)

    out = inverted_residual(x, kernel_params, stride=stride, use_res=use_res)
    out = jax.block_until_ready(out)

    ref = reference_forward(x, pt_params, stride=stride, use_res=use_res,
                            hidden=hidden)
    ref = jax.block_until_ready(ref)

    assert out.shape == (2, oup, 16, 16), out.shape
    assert jnp.allclose(out, ref, atol=1e-2, rtol=1e-2), float(
        jnp.max(jnp.abs(out - ref)))

    print("KERNEL_OK")
</pallas_src>

<mosaic_0001>
module attributes {stable_mosaic.version = 11 : i64} {
  func.func @_inverted_residual_kernel(%arg0: i32, %arg1: memref<1x4x256xf32, #tpu.memory_space<vmem>>, %arg2: memref<24x4xf32, #tpu.memory_space<vmem>>, %arg3: memref<24x1xf32, #tpu.memory_space<vmem>>, %arg4: memref<9x24x256xf32, #tpu.memory_space<vmem>>, %arg5: memref<24x1xf32, #tpu.memory_space<vmem>>, %arg6: memref<4x24xf32, #tpu.memory_space<vmem>>, %arg7: memref<4x1xf32, #tpu.memory_space<vmem>>, %arg8: memref<1x4x256xf32, #tpu.memory_space<vmem>>) attributes {dimension_semantics = [#tpu.dimension_semantics<parallel>], iteration_bounds = array<i64: 2>, scalar_prefetch = 0 : i64, scratch_operands = 0 : i64, tpu.core_type = #tpu.core_type<tc>, window_params = [{transform_indices = @transform_0, window_bounds = array<i64: 1, 4, 256>}, {pipeline_mode = #tpu.pipeline_mode<synchronous>, transform_indices = @transform_1, window_bounds = array<i64: 24, 4>}, {pipeline_mode = #tpu.pipeline_mode<synchronous>, transform_indices = @transform_2, window_bounds = array<i64: 24, 1>}, {pipeline_mode = #tpu.pipeline_mode<synchronous>, transform_indices = @transform_3, window_bounds = array<i64: 9, 24, 256>}, {pipeline_mode = #tpu.pipeline_mode<synchronous>, transform_indices = @transform_4, window_bounds = array<i64: 24, 1>}, {pipeline_mode = #tpu.pipeline_mode<synchronous>, transform_indices = @transform_5, window_bounds = array<i64: 4, 24>}, {pipeline_mode = #tpu.pipeline_mode<synchronous>, transform_indices = @transform_6, window_bounds = array<i64: 4, 1>}, {transform_indices = @transform_7, window_bounds = array<i64: 1, 4, 256>}]} {
    %c0 = arith.constant 0 : index
    %c0_0 = arith.constant 0 : index
    %c0_1 = arith.constant 0 : index
    %0 = vector.load %arg1[%c0, %c0_0, %c0_1] : memref<1x4x256xf32, #tpu.memory_space<vmem>>, vector<1x4x256xf32>
    %1 = vector.shape_cast %0 : vector<1x4x256xf32> to vector<4x256xf32>
    %c0_2 = arith.constant 0 : index
    %c0_3 = arith.constant 0 : index
    %2 = vector.load %arg2[%c0_2, %c0_3] : memref<24x4xf32, #tpu.memory_space<vmem>>, vector<24x4xf32>
    %cst = arith.constant dense<0.000000e+00> : vector<24x256xf32>
    %3 = tpu.matmul %2, %1, %cst {dimension_numbers = #tpu.dot_dimension_numbers<[1], [0], [0], [1], [0, 0, 1, 1], [], []>} : vector<24x4xf32>, vector<4x256xf32>, vector<24x256xf32> -> vector<24x256xf32>
    %c0_4 = arith.constant 0 : index
    %c0_5 = arith.constant 0 : index
    %4 = vector.load %arg3[%c0_4, %c0_5] : memref<24x1xf32, #tpu.memory_space<vmem>>, vector<24x1xf32>
    %5 = vector.broadcast %4 : vector<24x1xf32> to vector<24x256xf32>
    %6 = arith.addf %3, %5 : vector<24x256xf32>
    %cst_6 = arith.constant 0.000000e+00 : f32
    %cst_7 = arith.constant 6.000000e+00 : f32
    %7 = vector.broadcast %cst_6 : f32 to vector<24x256xf32>
    %8 = arith.maximumf %7, %6 : vector<24x256xf32>
    %9 = vector.broadcast %cst_7 : f32 to vector<24x256xf32>
    %10 = arith.minimumf %9, %8 : vector<24x256xf32>
    %c4 = arith.constant 4 : index
    %c0_8 = arith.constant 0 : index
    %c0_9 = arith.constant 0 : index
    %11 = vector.load %arg4[%c4, %c0_8, %c0_9] : memref<9x24x256xf32, #tpu.memory_space<vmem>>, vector<1x24x256xf32>
    %12 = vector.shape_cast %11 : vector<1x24x256xf32> to vector<24x256xf32>
    %13 = arith.mulf %10, %12 : vector<24x256xf32>
    %c17_i32 = arith.constant 17 : i32
    %14 = tpu.dynamic_rotate %10 by %c17_i32 dim 1 : vector<24x256xf32>, i32 -> vector<24x256xf32>
    %c0_10 = arith.constant 0 : index
    %c0_11 = arith.constant 0 : index
    %c0_12 = arith.constant 0 : index
    %15 = vector.load %arg4[%c0_10, %c0_11, %c0_12] : memref<9x24x256xf32, #tpu.memory_space<vmem>>, vector<1x24x256xf32>
    %16 = vector.shape_cast %15 : vector<1x24x256xf32> to vector<24x256xf32>
    %17 = arith.mulf %14, %16 : vector<24x256xf32>
    %18 = arith.addf %13, %17 : vector<24x256xf32>
    %c16_i32 = arith.constant 16 : i32
    %19 = tpu.dynamic_rotate %10 by %c16_i32 dim 1 : vector<24x256xf32>, i32 -> vector<24x256xf32>
    %c1 = arith.constant 1 : index
    %c0_13 = arith.constant 0 : index
    %c0_14 = arith.constant 0 : index
    %20 = vector.load %arg4[%c1, %c0_13, %c0_14] : memref<9x24x256xf32, #tpu.memory_space<vmem>>, vector<1x24x256xf32>
    %21 = vector.shape_cast %20 : vector<1x24x256xf32> to vector<24x256xf32>
    %22 = arith.mulf %19, %21 : vector<24x256xf32>
    %23 = arith.addf %18, %22 : vector<24x256xf32>
    %c15_i32 = arith.constant 15 : i32
    %24 = tpu.dynamic_rotate %10 by %c15_i32 dim 1 : vector<24x256xf32>, i32 -> vector<24x256xf32>
    %c2 = arith.constant 2 : index
    %c0_15 = arith.constant 0 : index
    %c0_16 = arith.constant 0 : index
    %25 = vector.load %arg4[%c2, %c0_15, %c0_16] : memref<9x24x256xf32, #tpu.memory_space<vmem>>, vector<1x24x256xf32>
    %26 = vector.shape_cast %25 : vector<1x24x256xf32> to vector<24x256xf32>
    %27 = arith.mulf %24, %26 : vector<24x256xf32>
    %28 = arith.addf %23, %27 : vector<24x256xf32>
    %c1_i32 = arith.constant 1 : i32
    %29 = tpu.dynamic_rotate %10 by %c1_i32 dim 1 : vector<24x256xf32>, i32 -> vector<24x256xf32>
    %c3 = arith.constant 3 : index
    %c0_17 = arith.constant 0 : index
    %c0_18 = arith.constant 0 : index
    %30 = vector.load %arg4[%c3, %c0_17, %c0_18] : memref<9x24x256xf32, #tpu.memory_space<vmem>>, vector<1x24x256xf32>
    %31 = vector.shape_cast %30 : vector<1x24x256xf32> to vector<24x256xf32>
    %32 = arith.mulf %29, %31 : vector<24x256xf32>
    %33 = arith.addf %28, %32 : vector<24x256xf32>
    %c255_i32 = arith.constant 255 : i32
    %34 = tpu.dynamic_rotate %10 by %c255_i32 dim 1 : vector<24x256xf32>, i32 -> vector<24x256xf32>
    %c5 = arith.constant 5 : index
    %c0_19 = arith.constant 0 : index
    %c0_20 = arith.constant 0 : index
    %35 = vector.load %arg4[%c5, %c0_19, %c0_20] : memref<9x24x256xf32, #tpu.memory_space<vmem>>, vector<1x24x256xf32>
    %36 = vector.shape_cast %35 : vector<1x24x256xf32> to vector<24x256xf32>
    %37 = arith.mulf %34, %36 : vector<24x256xf32>
    %38 = arith.addf %33, %37 : vector<24x256xf32>
    %c241_i32 = arith.constant 241 : i32
    %39 = tpu.dynamic_rotate %10 by %c241_i32 dim 1 : vector<24x256xf32>, i32 -> vector<24x256xf32>
    %c6 = arith.constant 6 : index
    %c0_21 = arith.constant 0 : index
    %c0_22 = arith.constant 0 : index
    %40 = vector.load %arg4[%c6, %c0_21, %c0_22] : memref<9x24x256xf32, #tpu.memory_space<vmem>>, vector<1x24x256xf32>
    %41 = vector.shape_cast %40 : vector<1x24x256xf32> to vector<24x256xf32>
    %42 = arith.mulf %39, %41 : vector<24x256xf32>
    %43 = arith.addf %38, %42 : vector<24x256xf32>
    %c240_i32 = arith.constant 240 : i32
    %44 = tpu.dynamic_rotate %10 by %c240_i32 dim 1 : vector<24x256xf32>, i32 -> vector<24x256xf32>
    %c7 = arith.constant 7 : index
    %c0_23 = arith.constant 0 : index
    %c0_24 = arith.constant 0 : index
    %45 = vector.load %arg4[%c7, %c0_23, %c0_24] : memref<9x24x256xf32, #tpu.memory_space<vmem>>, vector<1x24x256xf32>
    %46 = vector.shape_cast %45 : vector<1x24x256xf32> to vector<24x256xf32>
    %47 = arith.mulf %44, %46 : vector<24x256xf32>
    %48 = arith.addf %43, %47 : vector<24x256xf32>
    %c239_i32 = arith.constant 239 : i32
    %49 = tpu.dynamic_rotate %10 by %c239_i32 dim 1 : vector<24x256xf32>, i32 -> vector<24x256xf32>
    %c8 = arith.constant 8 : index
    %c0_25 = arith.constant 0 : index
    %c0_26 = arith.constant 0 : index
    %50 = vector.load %arg4[%c8, %c0_25, %c0_26] : memref<9x24x256xf32, #tpu.memory_space<vmem>>, vector<1x24x256xf32>
    %51 = vector.shape_cast %50 : vector<1x24x256xf32> to vector<24x256xf32>
    %52 = arith.mulf %49, %51 : vector<24x256xf32>
    %53 = arith.addf %48, %52 : vector<24x256xf32>
    %c0_27 = arith.constant 0 : index
    %c0_28 = arith.constant 0 : index
    %54 = vector.load %arg5[%c0_27, %c0_28] : memref<24x1xf32, #tpu.memory_space<vmem>>, vector<24x1xf32>
    %55 = vector.broadcast %54 : vector<24x1xf32> to vector<24x256xf32>
    %56 = arith.addf %53, %55 : vector<24x256xf32>
    %cst_29 = arith.constant 0.000000e+00 : f32
    %cst_30 = arith.constant 6.000000e+00 : f32
    %57 = vector.broadcast %cst_29 : f32 to vector<24x256xf32>
    %58 = arith.maximumf %57, %56 : vector<24x256xf32>
    %59 = vector.broadcast %cst_30 : f32 to vector<24x256xf32>
    %60 = arith.minimumf %59, %58 : vector<24x256xf32>
    %c0_31 = arith.constant 0 : index
    %c0_32 = arith.constant 0 : index
    %61 = vector.load %arg6[%c0_31, %c0_32] : memref<4x24xf32, #tpu.memory_space<vmem>>, vector<4x24xf32>
    %cst_33 = arith.constant dense<0.000000e+00> : vector<4x256xf32>
    %62 = tpu.matmul %61, %60, %cst_33 {dimension_numbers = #tpu.dot_dimension_numbers<[1], [0], [0], [1], [0, 0, 1, 1], [], []>} : vector<4x24xf32>, vector<24x256xf32>, vector<4x256xf32> -> vector<4x256xf32>
    %c0_34 = arith.constant 0 : index
    %c0_35 = arith.constant 0 : index
    %63 = vector.load %arg7[%c0_34, %c0_35] : memref<4x1xf32, #tpu.memory_space<vmem>>, vector<4x1xf32>
    %64 = vector.broadcast %63 : vector<4x1xf32> to vector<4x256xf32>
    %65 = arith.addf %62, %64 : vector<4x256xf32>
    %66 = arith.addf %65, %1 : vector<4x256xf32>
    %c0_36 = arith.constant 0 : index
    %c0_37 = arith.constant 0 : index
    %c0_38 = arith.constant 0 : index
    %67 = vector.load %arg8[%c0_36, %c0_37, %c0_38] : memref<1x4x256xf32, #tpu.memory_space<vmem>>, vector<1x4x256xf32>
    %68 = vector.shape_cast %67 : vector<1x4x256xf32> to vector<4x256xf32>
    %69 = vector.shape_cast %66 : vector<4x256xf32> to vector<1x4x256xf32>
    tpu.vector_store %arg8[%c0_36, %c0_37, %c0_38], %69 {strides = array<i32>} : memref<1x4x256xf32, #tpu.memory_space<vmem>>, vector<1x4x256xf32>,
    return
  }
  func.func @transform_0(%arg0: i32) -> (i32, i32, i32) {
    %c0_i32 = arith.constant 0 : i32
    %c0_i32_0 = arith.constant 0 : i32
    %c0_i32_1 = arith.constant 0 : i32
    return %arg0, %c0_i32, %c0_i32_0 : i32, i32, i32
  }
  func.func @transform_1(%arg0: i32) -> (i32, i32) {
    %c0_i32 = arith.constant 0 : i32
    %c0_i32_0 = arith.constant 0 : i32
    %c0_i32_1 = arith.constant 0 : i32
    return %c0_i32, %c0_i32_0 : i32, i32
  }
  func.func @transform_2(%arg0: i32) -> (i32, i32) {
    %c0_i32 = arith.constant 0 : i32
    %c0_i32_0 = arith.constant 0 : i32
    %c0_i32_1 = arith.constant 0 : i32
    return %c0_i32, %c0_i32_0 : i32, i32
  }
  func.func @transform_3(%arg0: i32) -> (i32, i32, i32) {
    %c0_i32 = arith.constant 0 : i32
    %c0_i32_0 = arith.constant 0 : i32
    %c0_i32_1 = arith.constant 0 : i32
    %c0_i32_2 = arith.constant 0 : i32
    return %c0_i32, %c0_i32_0, %c0_i32_1 : i32, i32, i32
  }
  func.func @transform_4(%arg0: i32) -> (i32, i32) {
    %c0_i32 = arith.constant 0 : i32
    %c0_i32_0 = arith.constant 0 : i32
    %c0_i32_1 = arith.constant 0 : i32
    return %c0_i32, %c0_i32_0 : i32, i32
  }
  func.func @transform_5(%arg0: i32) -> (i32, i32) {
    %c0_i32 = arith.constant 0 : i32
    %c0_i32_0 = arith.constant 0 : i32
    %c0_i32_1 = arith.constant 0 : i32
    return %c0_i32, %c0_i32_0 : i32, i32
  }
  func.func @transform_6(%arg0: i32) -> (i32, i32) {
    %c0_i32 = arith.constant 0 : i32
    %c0_i32_0 = arith.constant 0 : i32
    %c0_i32_1 = arith.constant 0 : i32
    return %c0_i32, %c0_i32_0 : i32, i32
  }
  func.func @transform_7(%arg0: i32) -> (i32, i32, i32) {
    %c0_i32 = arith.constant 0 : i32
    %c0_i32_0 = arith.constant 0 : i32
    %c0_i32_1 = arith.constant 0 : i32
    return %arg0, %c0_i32, %c0_i32_0 : i32, i32, i32
  }
}

</mosaic_0001>

<bundles_post_ra>
// kernel: tpu_custom_call.1
= control target key start
LH: loop header
LB: loop body
LE: loop exit
PB: predicated region body
PF: predicated region fallthrough
CT: control target
= control target key end

     0   :  { %12 = vsyncpa [#allocation3], 0  ;;  %s1578_s0 = inlined_call_operand.vmem [shape: f32[2,4,256], index: 0, kind: input, shape index: {}]   ;;  %s1579_s1 = inlined_call_operand.vmem [shape: f32[24,4], index: 1, kind: input, shape index: {}]   ;;  %s1580_s2 = inlined_call_operand.vmem [shape: f32[24,1], index: 2, kind: input, shape index: {}]   ;;  %s1581_s3 = inlined_call_operand.hbm [shape: f32[9,24,256], index: 3, kind: input, shape index: {}]   ;;  %s1582_s4 = inlined_call_operand.vmem [shape: f32[24,1], index: 4, kind: input, shape index: {}]   ;;  %s1583_s5 = inlined_call_operand.vmem [shape: f32[4,24], index: 5, kind: input, shape index: {}]   ;;  %s1584_s6 = inlined_call_operand.vmem [shape: f32[4,1], index: 6, kind: input, shape index: {}]   ;;  %s1585_s7 = inlined_call_operand.hbm [shape: f32[2,4,256], index: 7, kind: output, shape index: {}]  }
   0x1   :  { %13 = vsyncpa [#allocation4], 0 }
   0x2   :  { %15 = vsyncpa [#allocation4 + $0x1], 0  ;;  %s1145_s24 = smov 0   ;;  %s1147_s25 = smov 0  }
   0x3   :  { %s1149_s26 = smov 0   ;;  %s1151_s27 = smov 0  }
   0x4 LB: > { %s1166_s28 = sadd.s32 4294967295, %s1091_s27   ;;  %s905_s29 = sadd.s32 4294967294, %s1091_s27   ;;  %s1091_s27 = sphi %s1151_s27, %s1591_s27   ;;  %s1087_s26 = sphi %s1149_s26, %s1590_s26   ;;  %s1083_s25 = sphi %s1147_s25, %s1589_s25   ;;  %s1079_s24 = sphi %s1145_s24, %s1588_s24  }
   0x5   : > { %s1170_s30 = sadd.s32 1, %s1091_s27   ;;  %s180_s8 = sadd.s32 1, %s1087_s26 }
   0x6   : > { %s177_s9 = ssub.s32 %s1091_s27, %s1170_s30  ;;  %p190_p0 = scmp.ne.s32.totalorder %s1087_s26, %s1083_s25 }
   0x7   : > { %p178_p1 = scmp.eq.s32.totalorder %s177_s9, 0  ;;  %p191_p2 = scmp.eq.s32.totalorder %s1166_s28, 1 }
   0x8   : > { %p196_p3 = scmp.ne.s32.totalorder %s1083_s25, %s1079_s24  ;;  %p197_p4 = scmp.eq.s32.totalorder %s905_s29, 1 }
   0x9   : > { %s1181_s10 = scalar_select %p178_p1, %s1087_s26, %s180_s8  }
   0xa   : > { %p1183_p5 = por %p191_p2, %p190_p0  ;;  %p1187_p6 = por %p197_p4, %p196_p3 }
   0xb   : > { %p906_p7 = scmp.ge.s32.totalorder %s1091_s27, 1  ;;  %p204_p8 = scmp.lt.s32.totalorder %s1091_s27, 3 }
   0xc   : > { %p945_p9 = scmp.eq.s32.totalorder %s1166_s28, 0  ;;  %s221_s15 = sshll.u32 %s1581_s3, 4  ;;  %s222_s15 = int_to_ptr.hbm [resolvable:$true] %s221_s15 }
   0xd   : > { %p205_p10 = pnand %p906_p7, %p204_p8  ;;  %s1093_s16 = smov [#allocation2]  }
   0xe   : > { %s223_s17 = sshll.u32 %s1093_s16, 4  ;;  %s1094_s18 = smov 256   ;;  %s224_s17 = int_to_ptr.vmem [resolvable:$true] %s223_s17 }
   0xf   : > { %p937_p11 = pneg %p205_p10  ;;  %s1095_s19 = smov 16  }
  0x10   : > { %256 = sbr.rel (%p205_p10) target bundleno = 564 (0x234), region = 48 }
  0x11   : > { %p938_p12 = pnand %p945_p9, %p937_p11 }
  0x13   : > { %940 = dma.hbm_to_vmem [thread:$0]  (!%p938_p12), %s222_s15, 6912, %s224_s17, [#allocation3], %s1094_s18, %s1094_s18, %s1095_s19  }
  0x15   : > { %1070 = dma.done.wait (%p945_p9), [#allocation3], 6912  }
  0x16   : > { %1072 = vsyncadd (%p945_p9), [#allocation3], 4294960384  ;;  %p289_p13 = scmp.lt.s32.totalorder %s1166_s28, 1  ;;  %v1096_v0 = vmov 0   ;;  %v300_v2 = vld [vmem:[%s1580_s2 + $0x10] sm:$0xff]  ;;  %v298_v3 = vld [vmem:[%s1580_s2] sm:$0xff]  ;;  %v424_v38 = vlaneseq }
  0x17   : > { %993 = vset.pattern.permute.xlu1 %v1096_v0  ;;  %992 = vset.pattern.permute.xlu0 %v1096_v0  ;;  %vm330_vm0 = vcmask 1043456   ;;  %v295_v4 = vld [vmem:[%s1579_s1] sm:$0xff]  ;;  %vm320_vm1 = vcmask 31744   ;;  %v299_v5 = vld [vmem:[%s1580_s2 + $0x8] sm:$0xff]  ;;  %v297_v9 = vld [vmem:[%s1579_s1 + $0x10] sm:$0xff]  ;;  %s1097_s23 = smov 17  }
  0x18   : > { %s290_s20 = scalar_select %p289_p13, %s1166_s28, 1  ;;  %994 = vset.pattern.permute.xlu2 %v1096_v0  ;;  %313 = vperm.xlu0 %992, %v300_v2   ;;  %v296_v8 = vld [vmem:[%s1579_s1 + $0x8] sm:$0xff]  ;;  %v1326_v40 = vand.u32 127, %v424_v38  ;;  %v434_v50 = vld [vmem:[#allocation2 + $0x8] sm:$0xff]  ;;  %v471_v57 = vld [vmem:[#allocation2 + $0x30] sm:$0xff]  ;;  %vm760_vm10 = vcmask 195584  }
  0x19   : > { %303 = vperm.xlu1 %993, %v298_v3   ;;  %s1099_s8 = smov 15   ;;  %s1100_s9 = smov 1   ;;  %v400_v43 = vld [vmem:[#allocation2 + $0xc0] sm:$0xff]  ;;  %v719_v51 = vld [vmem:[%s1582_s4 + $0x10] sm:$0xff]  ;;  %v472_v58 = vld [vmem:[#allocation2 + $0x38] sm:$0xff] }
  0x1a   : > { %s929_s21 = sshll.u32 %s290_s20, 3  ;;  %s1101_s13 = smov 127   ;;  %vm426_vm2 = vcmp.lt.s32.totalorder %v1326_v40, 17  ;;  %v433_v44 = vld [vmem:[#allocation2] sm:$0xff]  ;;  %v401_v53 = vld [vmem:[#allocation2 + $0xc8] sm:$0xff]  ;;  %vm463_vm3 = vcmp.lt.s32.totalorder %v1326_v40, 16 }
  0x1b   : > { %s293_s29 = scalar_lea.vmem %s1578_s0, %s929_s21  ;;  %s1102_s14 = smov 113   ;;  %v718_v2 = vld [vmem:[%s1582_s4 + $0x8] sm:$0xff]  ;;  %v754_v3 = vld [vmem:[%s1584_s6] sm:$0xf]  ;;  %vm501_vm4 = vcmp.lt.s32.totalorder %v1326_v40, 15  ;;  %vm539_vm5 = vcmp.lt.s32.totalorder %v1326_v40, 1 }
  0x1c   : > { %v294_v1 = vld [vmem:[%s293_s29] sm:$0xff]  ;;  %s1098_s29 = smov 16   ;;  %s1103_s15 = smov 112   ;;  %vm577_vm6 = vcmp.lt.s32.totalorder %v1326_v40, 127  ;;  %vm615_vm7 = vcmp.lt.s32.totalorder %v1326_v40, 113  ;;  %vm653_vm8 = vcmp.lt.s32.totalorder %v1326_v40, 112 }
  0x1d   : > { %317 = vst [vmem:[#allocation1] ss:$2 sm:$0xff] %v294_v1  ;;  %s1104_s16 = smov 111   ;;  %vm691_vm9 = vcmp.lt.s32.totalorder %v1326_v40, 111 }
  0x20   : > { %308 = vperm.xlu0 %992, %v299_v5  }
  0x24   : > { %v318_v6 = vld.sshfl [vmem:[#allocation1] sm:$0xff pattern:$0x75316420]  ;;  %v319_v7 = vld.sshfl [vmem:[#allocation1 + $0x8] sm:$0xff pattern:$0x75316420] }
  0x25   : > { %914 = vmatpush.msk.msra.mxu0 %vm330_vm0, %v318_v6  ;;  %918 = vmatpush.msk.msra.mxu1 %vm330_vm0, %v319_v7  ;;  %804 = vst [vmem:[#allocation1] ss:$2 sm:$0xff] %v294_v1 }
  0x26   : > { %915 = vmatmul.msk.f32.vlgmr.msra.gmra.mxu0 %vm320_vm1, %v295_v4  ;;  %919 = vmatmul.msk.f32.vlgmr.msra.gmra.mxu1 %vm320_vm1, %v295_v4 }
  0x2e   : > { %916 = vmatmul.msk.f32.gmra.mxu0 %vm320_vm1, %v296_v8  ;;  %920 = vmatmul.msk.f32.gmra.mxu1 %vm320_vm1, %v296_v8  ;;  %v509_v8 = vld [vmem:[#allocation2 + $0x60] sm:$0xff] }
  0x36   : > { %917 = vmatmul.msk.f32.gmra.mxu0 %vm320_vm1, %v297_v9  ;;  %921 = vmatmul.msk.f32.gmra.mxu1 %vm320_vm1, %v297_v9  ;;  %v510_v9 = vld [vmem:[#allocation2 + $0x68] sm:$0xff] }
  0x8a   : > { %v314_v10 = vpop.permute.xlu0 %313 }
  0x8b   : > { %v304_v11 = vpop.permute.xlu1 %303 }
  0x92   : > { %v309_v20 = vpop.permute.xlu0 %308 }
  0xa3   : > { %v352_v12 = vpop.f32.mrf.mxu0  ;;  %v378_v13 = vpop.f32.mrf.mxu1 }
  0xa4   : > { %v353_v14 = vadd.f32 %v352_v12, %v304_v11  ;;  %v379_v15 = vadd.f32 %v378_v13, %v304_v11 }
  0xa6   : > { %v387_v16 = vmax.f32 %v353_v14, 0.0  ;;  %v388_v17 = vmax.f32 %v379_v15, 0.0 }
  0xa8   : > { %v1228_v18 = vmin.f32 %v387_v16, 6.0  ;;  %v1230_v19 = vmin.f32 %v388_v17, 6.0 }
  0xaa   : > { %418 = vrot.lane.b32.xlu1 %v1230_v19, %s1097_s23  ;;  %412 = vrot.lane.b32.xlu0 %v1228_v18, %s1097_s23  ;;  %v406_v48 = vmul.f32 %v400_v43, %v1228_v18  ;;  %v407_v59 = vmul.f32 %v401_v53, %v1230_v19 }
  0xab   : > { %v355_v21 = vpop.f32.mrf.mxu0  ;;  %v381_v25 = vpop.f32.mrf.mxu1 }
  0xac   : > { %v356_v22 = vadd.f32 %v355_v21, %v309_v20  ;;  %v382_v26 = vadd.f32 %v381_v25, %v309_v20  ;;  %v547_v20 = vld [vmem:[#allocation2 + $0x90] sm:$0xff]  ;;  %v548_v21 = vld [vmem:[#allocation2 + $0x98] sm:$0xff] }
  0xae   : > { %v389_v23 = vmax.f32 %v356_v22, 0.0  ;;  %v390_v27 = vmax.f32 %v382_v26, 0.0 }
  0xb0   : > { %v1236_v24 = vmin.f32 %v389_v23, 6.0  ;;  %v1274_v30 = vmin.f32 %v390_v27, 6.0 }
  0xb2   : > { %457 = vrot.lane.b32.xlu1 %v1230_v19, %s1098_s29  ;;  %414 = vrot.lane.b32.xlu2 %v1236_v24, %s1097_s23 }
  0xb3   : > { %451 = vrot.lane.b32.xlu0 %v1228_v18, %s1098_s29  ;;  %v358_v28 = vpop.f32.mrf.mxu0  ;;  %v384_v32 = vpop.f32.mrf.mxu1 }
  0xb4   : > { %v359_v29 = vadd.f32 %v358_v28, %v314_v10  ;;  %v385_v34 = vadd.f32 %v384_v32, %v314_v10 }
  0xb6   : > { %v391_v31 = vmax.f32 %v359_v29, 0.0  ;;  %v392_v35 = vmax.f32 %v385_v34, 0.0  ;;  %v585_v34 = vld [vmem:[#allocation2 + $0xf0] sm:$0xff] }
  0xb8   : > { %v1282_v33 = vmin.f32 %v391_v31, 6.0  ;;  %v1290_v36 = vmin.f32 %v392_v35, 6.0  ;;  %v586_v35 = vld [vmem:[#allocation2 + $0xf8] sm:$0xff] }
  0xba   : > { %495 = vrot.lane.b32.xlu1 %v1230_v19, %s1099_s8  ;;  %453 = vrot.lane.b32.xlu2 %v1236_v24, %s1098_s29 }
  0xbb   : > { %489 = vrot.lane.b32.xlu0 %v1228_v18, %s1099_s8 }
  0xc2   : > { %533 = vrot.lane.b32.xlu1 %v1230_v19, %s1100_s9  ;;  %491 = vrot.lane.b32.xlu2 %v1236_v24, %s1099_s8 }
  0xc3   : > { %527 = vrot.lane.b32.xlu0 %v1228_v18, %s1100_s9 }
  0xca   : > { %571 = vrot.lane.b32.xlu1 %v1230_v19, %s1101_s13  ;;  %529 = vrot.lane.b32.xlu2 %v1236_v24, %s1100_s9 }
  0xcb   : > { %565 = vrot.lane.b32.xlu0 %v1228_v18, %s1101_s13 }
  0xd2   : > { %609 = vrot.lane.b32.xlu1 %v1230_v19, %s1102_s14  ;;  %567 = vrot.lane.b32.xlu2 %v1236_v24, %s1101_s13 }
  0xd3   : > { %603 = vrot.lane.b32.xlu0 %v1228_v18, %s1102_s14 }
  0xda   : > { %647 = vrot.lane.b32.xlu1 %v1230_v19, %s1103_s15  ;;  %605 = vrot.lane.b32.xlu2 %v1236_v24, %s1102_s14 }
  0xdb   : > { %641 = vrot.lane.b32.xlu0 %v1228_v18, %s1103_s15 }
  0xe2   : > { %643 = vrot.lane.b32.xlu2 %v1236_v24, %s1103_s15  ;;  %679 = vrot.lane.b32.xlu1 %v1228_v18, %s1104_s16 }
  0xe3   : > { %420 = vrot.lane.b32.xlu0 %v1274_v30, %s1097_s23 }
  0xea   : > { %681 = vrot.lane.b32.xlu2 %v1236_v24, %s1104_s16  ;;  %416 = vrot.lane.b32.xlu1 %v1282_v33, %s1097_s23 }
  0xeb   : > { %459 = vrot.lane.b32.xlu0 %v1274_v30, %s1098_s29 }
  0xf2   : > { %422 = vrot.lane.b32.xlu2 %v1290_v36, %s1097_s23  ;;  %455 = vrot.lane.b32.xlu1 %v1282_v33, %s1098_s29 }
  0xf3   : > { %497 = vrot.lane.b32.xlu0 %v1274_v30, %s1099_s8 }
  0xfa   : > { %461 = vrot.lane.b32.xlu2 %v1290_v36, %s1098_s29  ;;  %493 = vrot.lane.b32.xlu1 %v1282_v33, %s1099_s8 }
  0xfb   : > { %535 = vrot.lane.b32.xlu0 %v1274_v30, %s1100_s9 }
 0x102   : > { %499 = vrot.lane.b32.xlu2 %v1290_v36, %s1099_s8  ;;  %531 = vrot.lane.b32.xlu1 %v1282_v33, %s1100_s9 }
 0x103   : > { %573 = vrot.lane.b32.xlu0 %v1274_v30, %s1101_s13 }
 0x10a   : > { %537 = vrot.lane.b32.xlu2 %v1290_v36, %s1100_s9  ;;  %569 = vrot.lane.b32.xlu1 %v1282_v33, %s1101_s13  ;;  %s1045_s9 = scalar_lea.hbm %s1585_s7, 16 }
 0x10b   : > { %611 = vrot.lane.b32.xlu0 %v1274_v30, %s1102_s14 }
 0x10c   : > { %v1316_v37 = vpop.permute.xlu2 %414 }
 0x112   : > { %575 = vrot.lane.b32.xlu2 %v1290_v36, %s1101_s13  ;;  %607 = vrot.lane.b32.xlu1 %v1282_v33, %s1102_s14  ;;  %s286_s13 = sand.u32 1, %s1083_s25  }
 0x113   : > { %649 = vrot.lane.b32.xlu0 %v1274_v30, %s1103_s15 }
 0x114   : > { %v1324_v39 = vpop.permute.xlu2 %453 }
 0x11a   : > { %613 = vrot.lane.b32.xlu2 %v1290_v36, %s1102_s14  ;;  %645 = vrot.lane.b32.xlu1 %v1282_v33, %s1103_s15  ;;  %s911_s14 = sshll.u32 %s286_s13, 3 }
 0x11b   : > { %687 = vrot.lane.b32.xlu0 %v1274_v30, %s1104_s16  ;;  %s288_s19 = scalar_lea.vmem [#allocation5], %s911_s14 }
 0x11c   : > { %v419_v41 = vpop.permute.xlu1 %418  ;;  %v1335_v42 = vpop.permute.xlu2 %491  ;;  %s831_s20 = sshll.u32 %s288_s19, 4  ;;  %s832_s20 = int_to_ptr.vmem [resolvable:$true] %s831_s20 }
 0x11d   : > { %v413_v45 = vpop.permute.xlu0 %412 }
 0x11e   : > { %v427_v46 = vsel %vm426_vm2, %v413_v45, %v419_v41  ;;  %v430_v47 = vsel %vm426_vm2, %v419_v41, %v413_v45 }
 0x11f   : > { %v439_v49 = vmul.f32 %v433_v44, %v430_v47  ;;  %v440_v54 = vmul.f32 %v434_v50, %v427_v46  ;;  %v623_v50 = vld [vmem:[#allocation2 + $0x120] sm:$0xff] }
 0x121   : > { %v445_v52 = vadd.f32 %v439_v49, %v406_v48  ;;  %v446_v63 = vadd.f32 %v440_v54, %v407_v59 }
 0x122   : > { %651 = vrot.lane.b32.xlu2 %v1290_v36, %s1103_s15  ;;  %683 = vrot.lane.b32.xlu1 %v1282_v33, %s1104_s16  ;;  %s930_s15 = sshll.u32 %s1166_s28, 3  ;;  %s818_s28 = scalar_lea.sflag [#allocation4], %s286_s13 }
 0x123   : > { %732 = vperm.xlu0 %992, %v719_v51   ;;  %v624_v51 = vld [vmem:[#allocation2 + $0x128] sm:$0xff]  ;;  %s829_s18 = scalar_lea.hbm %s1585_s7, %s930_s15 }
 0x124   : > { %v458_v55 = vpop.permute.xlu1 %457  ;;  %v1350_v56 = vpop.permute.xlu2 %529  ;;  %s833_s21 = sshll.u32 %s829_s18, 4  ;;  %s834_s21 = int_to_ptr.hbm [resolvable:$true] %s833_s21 }
 0x125   : > { %v452_v60 = vpop.permute.xlu0 %451  ;;  %s1039_s22 = sshra.s32 %s834_s21, 4  ;;  %s1040_s22 = int_to_ptr.hbm [resolvable:$true] %s1039_s22 }
 0x126   : > { %v464_v61 = vsel %vm463_vm3, %v452_v60, %v458_v55  ;;  %v467_v62 = vsel %vm463_vm3, %v458_v55, %v452_v60  ;;  %s1041_s23 = scalar_lea.hbm %s1040_s22, 8  ;;  %p1046_p3 = scmp.lt.s32.totalorder %s1040_s22, %s1585_s7 }
 0x127   : > { %v477_v0 = vmul.f32 %v471_v57, %v467_v62  ;;  %v478_v1 = vmul.f32 %v472_v58, %v464_v61  ;;  %v661_v62 = vld [vmem:[#allocation2 + $0x150] sm:$0xff]  ;;  %p1042_p0 = scmp.ne.s32.totalorder %s1040_s22, %s1041_s23  ;;  %p1047_p4 = scmp.lt.s32.totalorder %s1045_s9, %s1041_s23 }
 0x129   : > { %v483_v4 = vadd.f32 %v477_v0, %v445_v52  ;;  %v484_v5 = vadd.f32 %v478_v1, %v446_v63  ;;  %v662_v63 = vld [vmem:[#allocation2 + $0x158] sm:$0xff]  ;;  %p1043_p1 = pnand %p1042_p0, %p1183_p5  ;;  %p1048_p7 = por %p1047_p4, %p1046_p3 }
 0x12a   : > { %689 = vrot.lane.b32.xlu2 %v1290_v36, %s1104_s16  ;;  %727 = vperm.xlu1 %993, %v718_v2  }
 0x12b   : > { %757 = vperm.xlu0 %992, %v754_v3   ;;  %p1044_p2 = pneg %p1043_p1 }
 0x12c   : > { %v496_v6 = vpop.permute.xlu1 %495  ;;  %v1366_v7 = vpop.permute.xlu2 %567 }
 0x12d   : > { %v490_v10 = vpop.permute.xlu0 %489  ;;  %p1049_p8 = pnand %p1048_p7, %p1044_p2 }
 0x12e   : > { %v502_v11 = vsel %vm501_vm4, %v490_v10, %v496_v6  ;;  %v505_v12 = vsel %vm501_vm4, %v496_v6, %v490_v10 }
 0x12f   : > { %v515_v13 = vmul.f32 %v509_v8, %v505_v12  ;;  %v516_v14 = vmul.f32 %v510_v9, %v502_v11 }
 0x131   : > { %v521_v15 = vadd.f32 %v515_v13, %v483_v4  ;;  %v522_v16 = vadd.f32 %v516_v14, %v484_v5 }
 0x132   : > { %685 = vrot.lane.b32.xlu2 %v1230_v19, %s1104_s16  ;;  %v717_v19 = vld [vmem:[%s1582_s4] sm:$0xff] }
 0x134   : > { %v534_v17 = vpop.permute.xlu1 %533  ;;  %v1375_v18 = vpop.permute.xlu2 %605 }
 0x135   : > { %v528_v22 = vpop.permute.xlu0 %527 }
 0x136   : > { %v540_v23 = vsel %vm539_vm5, %v528_v22, %v534_v17  ;;  %v543_v25 = vsel %vm539_vm5, %v534_v17, %v528_v22 }
 0x137   : > { %v553_v26 = vmul.f32 %v547_v20, %v543_v25  ;;  %v554_v27 = vmul.f32 %v548_v21, %v540_v23 }
 0x139   : > { %v559_v28 = vadd.f32 %v553_v26, %v521_v15  ;;  %v560_v29 = vadd.f32 %v554_v27, %v522_v16  ;;  %v402_v26 = vld [vmem:[#allocation2 + $0xd0] sm:$0xff]  ;;  %v403_v27 = vld [vmem:[#allocation2 + $0xd8] sm:$0xff] }
 0x13a   : > { %722 = vperm.xlu2 %994, %v717_v19   ;;  %v404_v19 = vld [vmem:[#allocation2 + $0xe0] sm:$0xff] }
 0x13c   : > { %v572_v31 = vpop.permute.xlu1 %571  ;;  %v1385_v32 = vpop.permute.xlu2 %643 }
 0x13d   : > { %v566_v38 = vpop.permute.xlu0 %565 }
 0x13e   : > { %v578_v41 = vsel %vm577_vm6, %v566_v38, %v572_v31  ;;  %v581_v43 = vsel %vm577_vm6, %v572_v31, %v566_v38  ;;  %v435_v31 = vld [vmem:[#allocation2 + $0x10] sm:$0xff] }
 0x13f   : > { %v591_v44 = vmul.f32 %v585_v34, %v578_v41  ;;  %v592_v45 = vmul.f32 %v586_v35, %v581_v43  ;;  %v436_v34 = vld [vmem:[#allocation2 + $0x18] sm:$0xff]  ;;  %v405_v41 = vld [vmem:[#allocation2 + $0xe8] sm:$0xff] }
 0x141   : > { %v597_v46 = vadd.f32 %v591_v44, %v559_v28  ;;  %v598_v47 = vadd.f32 %v592_v45, %v560_v29  ;;  %v437_v44 = vld [vmem:[#allocation2 + $0x20] sm:$0xff]  ;;  %v438_v45 = vld [vmem:[#allocation2 + $0x28] sm:$0xff] }
 0x144   : > { %v610_v48 = vpop.permute.xlu1 %609  ;;  %v1392_v49 = vpop.permute.xlu2 %681 }
 0x145   : > { %v604_v52 = vpop.permute.xlu0 %603 }
 0x146   : > { %v616_v53 = vsel %vm615_vm7, %v604_v52, %v610_v48  ;;  %v619_v54 = vsel %vm615_vm7, %v610_v48, %v604_v52  ;;  %v473_v48 = vld [vmem:[#allocation2 + $0x40] sm:$0xff]  ;;  %v475_v52 = vld [vmem:[#allocation2 + $0x50] sm:$0xff] }
 0x147   : > { %v629_v55 = vmul.f32 %v623_v50, %v616_v53  ;;  %v630_v57 = vmul.f32 %v624_v51, %v619_v54  ;;  %v474_v50 = vld [vmem:[#allocation2 + $0x48] sm:$0xff]  ;;  %v476_v53 = vld [vmem:[#allocation2 + $0x58] sm:$0xff] }
 0x149   : > { %v635_v58 = vadd.f32 %v629_v55, %v597_v46  ;;  %v636_v59 = vadd.f32 %v630_v57, %v598_v47  ;;  %v408_v57 = vmul.f32 %v402_v26, %v1236_v24 }
 0x14c   : > { %v648_v60 = vpop.permute.xlu1 %647  ;;  %v423_v61 = vpop.permute.xlu2 %422 }
 0x14d   : > { %v642_v0 = vpop.permute.xlu0 %641 }
 0x14e   : > { %v654_v1 = vsel %vm653_vm8, %v642_v0, %v648_v60  ;;  %v657_v2 = vsel %vm653_vm8, %v648_v60, %v642_v0 }
 0x14f   : > { %v667_v3 = vmul.f32 %v661_v62, %v654_v1  ;;  %v668_v4 = vmul.f32 %v662_v63, %v657_v2  ;;  %v411_v62 = vmul.f32 %v405_v41, %v1290_v36 }
 0x151   : > { %v1403_v5 = vadd.f32 %v667_v3, %v635_v58  ;;  %v1405_v6 = vadd.f32 %v668_v4, %v636_v59  ;;  %v409_v58 = vmul.f32 %v403_v27, %v1274_v30  ;;  %v511_v4 = vld [vmem:[#allocation2 + $0x70] sm:$0xff] }
 0x154   : > { %v462_v8 = vpop.permute.xlu2 %461  ;;  %v1407_v9 = vpop.permute.xlu1 %679 }
 0x155   : > { %v421_v10 = vpop.permute.xlu0 %420 }
 0x156   : > { %v428_v35 = vsel %vm426_vm2, %v1316_v37, %v421_v10  ;;  %v431_v38 = vsel %vm426_vm2, %v421_v10, %v1316_v37  ;;  %v512_v10 = vld [vmem:[#allocation2 + $0x78] sm:$0xff] }
 0x157   : > { %v441_v59 = vmul.f32 %v435_v31, %v431_v38  ;;  %v442_v60 = vmul.f32 %v436_v34, %v428_v35  ;;  %v549_v34 = vld [vmem:[#allocation2 + $0xa0] sm:$0xff]  ;;  %v550_v35 = vld [vmem:[#allocation2 + $0xa8] sm:$0xff] }
 0x15c   : > { %v500_v11 = vpop.permute.xlu2 %499  ;;  %v417_v12 = vpop.permute.xlu1 %416 }
 0x15d   : > { %v460_v13 = vpop.permute.xlu0 %459  ;;  %v429_v46 = vsel %vm426_vm2, %v417_v12, %v423_v61  ;;  %v432_v47 = vsel %vm426_vm2, %v423_v61, %v417_v12  ;;  %v410_v61 = vmul.f32 %v404_v19, %v1282_v33  ;;  %v514_v33 = vld [vmem:[#allocation2 + $0x88] sm:$0xff] }
 0x15e   : > { %v465_v51 = vsel %vm463_vm3, %v1324_v39, %v460_v13  ;;  %v468_v37 = vsel %vm463_vm3, %v460_v13, %v1324_v39  ;;  %v443_v63 = vmul.f32 %v437_v44, %v432_v47  ;;  %v444_v39 = vmul.f32 %v438_v45, %v429_v46 }
 0x15f   : > { %v479_v0 = vmul.f32 %v473_v48, %v468_v37  ;;  %v480_v1 = vmul.f32 %v474_v50, %v465_v51  ;;  %v447_v13 = vadd.f32 %v441_v59, %v408_v57  ;;  %v551_v37 = vld [vmem:[#allocation2 + $0xb0] sm:$0xff] }
 0x160   : > { %v449_v19 = vadd.f32 %v443_v63, %v410_v61  ;;  %v450_v31 = vadd.f32 %v444_v39, %v411_v62  ;;  %v587_v62 = vld [vmem:[#allocation2 + $0x100] sm:$0xff]  ;;  %v588_v63 = vld [vmem:[#allocation2 + $0x108] sm:$0xff] }
 0x161   : > { %v485_v45 = vadd.f32 %v479_v0, %v447_v13  ;;  %v700_v0 = vld [vmem:[#allocation2 + $0x188] sm:$0xff] }
 0x164   : > { %v1409_v14 = vpop.permute.xlu2 %537  ;;  %v456_v15 = vpop.permute.xlu1 %455 }
 0x165   : > { %v498_v16 = vpop.permute.xlu0 %497  ;;  %v466_v54 = vsel %vm463_vm3, %v456_v15, %v462_v8  ;;  %v469_v55 = vsel %vm463_vm3, %v462_v8, %v456_v15  ;;  %v513_v8 = vld [vmem:[#allocation2 + $0x80] sm:$0xff]  ;;  %v448_v15 = vadd.f32 %v442_v60, %v409_v58 }
 0x166   : > { %v481_v2 = vmul.f32 %v475_v52, %v469_v55  ;;  %v482_v3 = vmul.f32 %v476_v53, %v466_v54  ;;  %v503_v24 = vsel %vm501_vm4, %v1335_v42, %v498_v16  ;;  %v506_v30 = vsel %vm501_vm4, %v498_v16, %v1335_v42  ;;  %v552_v52 = vld [vmem:[#allocation2 + $0xb8] sm:$0xff] }
 0x167   : > { %v486_v46 = vadd.f32 %v480_v1, %v448_v15  ;;  %v590_v54 = vld [vmem:[#allocation2 + $0x118] sm:$0xff] }
 0x168   : > { %v487_v47 = vadd.f32 %v481_v2, %v449_v19  ;;  %v488_v48 = vadd.f32 %v482_v3, %v450_v31 }
 0x16c   : > { %v1411_v17 = vpop.permute.xlu2 %575  ;;  %v494_v20 = vpop.permute.xlu1 %493 }
 0x16d   : > { %v536_v21 = vpop.permute.xlu0 %535  ;;  %v504_v36 = vsel %vm501_vm4, %v494_v20, %v500_v11  ;;  %v507_v12 = vsel %vm501_vm4, %v500_v11, %v494_v20  ;;  %v517_v11 = vmul.f32 %v511_v4, %v506_v30  ;;  %v518_v20 = vmul.f32 %v512_v10, %v503_v24  ;;  %v627_v30 = vld [vmem:[#allocation2 + $0x140] sm:$0xff] }
 0x16e   : > { %v541_v42 = vsel %vm539_vm5, %v1350_v56, %v536_v21  ;;  %v544_v16 = vsel %vm539_vm5, %v536_v21, %v1350_v56  ;;  %v519_v41 = vmul.f32 %v513_v8, %v507_v12  ;;  %v520_v44 = vmul.f32 %v514_v33, %v504_v36  ;;  %v589_v21 = vld [vmem:[#allocation2 + $0x110] sm:$0xff]  ;;  %v628_v8 = vld [vmem:[#allocation2 + $0x148] sm:$0xff] }
 0x16f   : > { %v555_v50 = vmul.f32 %v549_v34, %v544_v16  ;;  %v556_v51 = vmul.f32 %v550_v35, %v541_v42  ;;  %v523_v58 = vadd.f32 %v517_v11, %v485_v45  ;;  %v524_v59 = vadd.f32 %v518_v20, %v486_v46  ;;  %v665_v35 = vld [vmem:[#allocation2 + $0x170] sm:$0xff]  ;;  %v666_v42 = vld [vmem:[#allocation2 + $0x178] sm:$0xff] }
 0x170   : > { %v525_v60 = vadd.f32 %v519_v41, %v487_v47  ;;  %v526_v61 = vadd.f32 %v520_v44, %v488_v48  ;;  %v625_v11 = vld [vmem:[#allocation2 + $0x130] sm:$0xff]  ;;  %v626_v20 = vld [vmem:[#allocation2 + $0x138] sm:$0xff] }
 0x171   : > { %v561_v1 = vadd.f32 %v555_v50, %v523_v58  ;;  %v562_v2 = vadd.f32 %v556_v51, %v524_v59  ;;  %v663_v50 = vld [vmem:[#allocation2 + $0x160] sm:$0xff]  ;;  %v664_v51 = vld [vmem:[#allocation2 + $0x168] sm:$0xff]  ;;  %v701_v58 = vld [vmem:[#allocation2 + $0x190] sm:$0xff] }
 0x172   : > { %v702_v59 = vld [vmem:[#allocation2 + $0x198] sm:$0xff] }
 0x174   : > { %v1413_v22 = vpop.permute.xlu2 %613  ;;  %v1415_v23 = vpop.permute.xlu1 %531 }
 0x175   : > { %v1417_v25 = vpop.permute.xlu0 %573  ;;  %v542_v53 = vsel %vm539_vm5, %v1415_v23, %v1409_v14  ;;  %v545_v56 = vsel %vm539_vm5, %v1409_v14, %v1415_v23 }
 0x176   : > { %v557_v14 = vmul.f32 %v551_v37, %v545_v56  ;;  %v558_v23 = vmul.f32 %v552_v52, %v542_v53  ;;  %v579_v39 = vsel %vm577_vm6, %v1366_v7, %v1417_v25 }
 0x177   : > { %v593_v12 = vmul.f32 %v587_v62, %v579_v39 }
 0x178   : > { %v563_v31 = vadd.f32 %v557_v14, %v525_v60  ;;  %v564_v34 = vadd.f32 %v558_v23, %v526_v61 }
 0x179   : > { %v599_v53 = vadd.f32 %v593_v12, %v561_v1 }
 0x17c   : > { %v1419_v28 = vpop.permute.xlu2 %651  ;;  %v1421_v29 = vpop.permute.xlu1 %569 }
 0x17d   : > { %v1429_v43 = vpop.permute.xlu0 %611  ;;  %v580_v55 = vsel %vm577_vm6, %v1421_v29, %v1411_v17  ;;  %v583_v57 = vsel %vm577_vm6, %v1411_v17, %v1421_v29  ;;  %v582_v17 = vsel %vm577_vm6, %v1417_v25, %v1366_v7  ;;  %v699_v29 = vld [vmem:[#allocation2 + $0x180] sm:$0xff] }
 0x17e   : > { %v595_v3 = vmul.f32 %v589_v21, %v580_v55  ;;  %v596_v4 = vmul.f32 %v590_v54, %v583_v57  ;;  %v594_v13 = vmul.f32 %v588_v63, %v582_v17  ;;  %v620_v41 = vsel %vm615_vm7, %v1429_v43, %v1375_v18  ;;  %v703_v54 = vld [vmem:[#allocation2 + $0x1a0] sm:$0xff] }
 0x180   : > { %v601_v46 = vadd.f32 %v595_v3, %v563_v31  ;;  %v602_v47 = vadd.f32 %v596_v4, %v564_v34  ;;  %v600_v56 = vadd.f32 %v594_v13, %v562_v2 }
 0x184   : > { %v1459_v26 = vpop.permute.xlu2 %689  ;;  %v608_v27 = vpop.permute.xlu1 %607 }
 0x185   : > { %v1467_v38 = vpop.permute.xlu0 %649  ;;  %v618_v33 = vsel %vm615_vm7, %v608_v27, %v1413_v22  ;;  %v621_v36 = vsel %vm615_vm7, %v1413_v22, %v608_v27 }
 0x186   : > { %v633_v44 = vmul.f32 %v627_v30, %v618_v33  ;;  %v634_v45 = vmul.f32 %v628_v8, %v621_v36  ;;  %v655_v37 = vsel %vm653_vm8, %v1385_v32, %v1467_v38 }
 0x187   : > { %v669_v61 = vmul.f32 %v663_v50, %v655_v37 }
 0x188   : > { %v639_v55 = vadd.f32 %v633_v44, %v601_v46  ;;  %v640_v57 = vadd.f32 %v634_v45, %v602_v47  ;;  %v753_v44 = vld [vmem:[%s1583_s5] sm:$0xf] }
 0x18c   : > { %v686_v10 = vpop.permute.xlu2 %685  ;;  %v646_v24 = vpop.permute.xlu1 %645 }
 0x18d   : > { %v692_v7 = vsel %vm691_vm9, %v1407_v9, %v686_v10  ;;  %v695_v25 = vsel %vm691_vm9, %v686_v10, %v1407_v9  ;;  %v656_v22 = vsel %vm653_vm8, %v646_v24, %v1419_v28  ;;  %v659_v27 = vsel %vm653_vm8, %v1419_v28, %v646_v24  ;;  %v688_v16 = vpop.permute.xlu0 %687 }
 0x18e   : > { %v705_v15 = vmul.f32 %v699_v29, %v692_v7  ;;  %v706_v19 = vmul.f32 %v700_v0, %v695_v25  ;;  %v617_v9 = vsel %vm615_vm7, %v1375_v18, %v1429_v43  ;;  %v658_v18 = vsel %vm653_vm8, %v1467_v38, %v1385_v32 }
 0x18f   : > { %v671_v43 = vmul.f32 %v665_v35, %v656_v22  ;;  %v672_v52 = vmul.f32 %v666_v42, %v659_v27  ;;  %v631_v21 = vmul.f32 %v625_v11, %v617_v9  ;;  %v693_v60 = vsel %vm691_vm9, %v1392_v49, %v688_v16 }
 0x190   : > { %v711_v48 = vadd.f32 %v705_v15, %v1403_v5  ;;  %v712_v28 = vadd.f32 %v706_v19, %v1405_v6  ;;  %v632_v5 = vmul.f32 %v626_v20, %v620_v41  ;;  %v704_v6 = vld [vmem:[#allocation2 + $0x1a8] sm:$0xff]  ;;  %v696_v32 = vsel %vm691_vm9, %v688_v16, %v1392_v49 }
 0x191   : > { %v670_v62 = vmul.f32 %v664_v51, %v658_v18  ;;  %v677_v63 = vadd.f32 %v671_v43, %v639_v55  ;;  %v678_v39 = vadd.f32 %v672_v52, %v640_v57  ;;  %v637_v0 = vadd.f32 %v631_v21, %v599_v53  ;;  %v805_v51 = vld.sshfl [vmem:[#allocation1] sm:$0xff pattern:$0x75316420] }
 0x192   : > { %v638_v1 = vadd.f32 %v632_v5, %v600_v56  ;;  %v707_v2 = vmul.f32 %v701_v58, %v693_v60  ;;  %v708_v3 = vmul.f32 %v702_v59, %v696_v32 }
 0x193   : > { %v675_v30 = vadd.f32 %v669_v61, %v637_v0 }
 0x194   : > { %v684_v38 = vpop.permute.xlu1 %683  ;;  %v723_v49 = vpop.permute.xlu2 %722  ;;  %v676_v8 = vadd.f32 %v670_v62, %v638_v1 }
 0x195   : > { %v694_v14 = vsel %vm691_vm9, %v684_v38, %v1459_v26  ;;  %v697_v23 = vsel %vm691_vm9, %v1459_v26, %v684_v38  ;;  %v733_v24 = vpop.permute.xlu0 %732  ;;  %v735_v7 = vadd.f32 %v723_v49, %v711_v48  ;;  %v736_v25 = vadd.f32 %v723_v49, %v712_v28  ;;  %v806_v48 = vld.sshfl [vmem:[#allocation1 + $0x8] sm:$0xff pattern:$0x75316420] }
 0x196   : > { %v709_v17 = vmul.f32 %v703_v54, %v694_v14  ;;  %v710_v29 = vmul.f32 %v704_v6, %v697_v23  ;;  %v713_v40 = vadd.f32 %v707_v2, %v675_v30  ;;  %v714_v26 = vadd.f32 %v708_v3, %v676_v8 }
 0x197   : > { %v741_v42 = vmax.f32 %v735_v7, 0.0  ;;  %v742_v22 = vmax.f32 %v736_v25, 0.0 }
 0x198   : > { %v715_v4 = vadd.f32 %v709_v17, %v677_v63  ;;  %v716_v10 = vadd.f32 %v710_v29, %v678_v39 }
 0x199   : > { %v747_v9 = vmin.f32 %v741_v42, 6.0  ;;  %v748_v41 = vmin.f32 %v742_v22, 6.0 }
 0x19a   : > { %v739_v33 = vadd.f32 %v733_v24, %v715_v4  ;;  %v740_v36 = vadd.f32 %v733_v24, %v716_v10 }
 0x19c   : > { %v728_v12 = vpop.permute.xlu1 %727  ;;  %v745_v13 = vmax.f32 %v739_v33, 0.0  ;;  %v746_v15 = vmax.f32 %v740_v36, 0.0 }
 0x19d   : > { %v737_v19 = vadd.f32 %v728_v12, %v713_v40  ;;  %v738_v31 = vadd.f32 %v728_v12, %v714_v26  ;;  %v758_v45 = vpop.permute.xlu0 %757 }
 0x19e   : > { %v751_v34 = vmin.f32 %v745_v13, 6.0  ;;  %v752_v35 = vmin.f32 %v746_v15, 6.0 }
 0x19f   : > { %v743_v27 = vmax.f32 %v737_v19, 0.0  ;;  %v744_v16 = vmax.f32 %v738_v31, 0.0 }
 0x1a0   : > { %777 = vmatpush.msra.mxu2 %v751_v34  ;;  %797 = vmatpush.msra.mxu3 %v752_v35 }
 0x1a1   : > { %v749_v11 = vmin.f32 %v743_v27, 6.0  ;;  %v750_v20 = vmin.f32 %v744_v16, 6.0 }
 0x1a3   : > { %778 = vmatpush.msra.mxu2 %v749_v11  ;;  %798 = vmatpush.msra.mxu3 %v750_v20 }
 0x1a5   : > { %779 = vmatpush.msra.mxu2 %v747_v9  ;;  %799 = vmatpush.msra.mxu3 %v748_v41 }
 0x1a6   : > { %922 = vmatmul.msk.f32.vlgmr.msra.gmra.mxu2 %vm760_vm10, %v753_v44  ;;  %923 = vmatmul.msk.f32.vlgmr.msra.gmra.mxu3 %vm760_vm10, %v753_v44 }
 0x229   : > { %v781_v46 = vpop.f32.mrf.mxu2  ;;  %v801_v47 = vpop.f32.mrf.mxu3 }
 0x22a   : > { %v782_v28 = vadd.f32 %v781_v46, %v758_v45  ;;  %v802_v50 = vadd.f32 %v801_v47, %v758_v45 }
 0x22c   : > { %v810_v37 = vadd.f32 %v806_v48, %v802_v50  ;;  %v809_v18 = vadd.f32 %v805_v51, %v782_v28 }
 0x22e   : > { %v813_v43 = vrot.slane %v810_v37, 4 }
 0x230   : > { %v814_v52 = vsel %vm330_vm0, %v809_v18, %v813_v43 }
 0x231   : > { %816 = vst [vmem:[%s288_s19] sm:$0xff] %v814_v52 }
 0x232   : > { %1052 = shalt.err (!%p1049_p8)
}
 0x233   : > { %935 = dma.vmem_to_hbm [thread:$0]  (%p1183_p5), %s832_s20, 128, %s834_s21, %s818_s28  }
 0x234 PF: > { %p947_p9 = scmp.ge.s32.totalorder %s1091_s27, 2  ;;  %s845_s13 = sand.u32 1, %s1079_s24  }
 0x235   : > { %s846_s16 = scalar_lea.sflag [#allocation4], %s845_s13 }
 0x236   : > { %p942_p10 = pnand %p947_p9, %p1187_p6 }
 0x238   : > { %p943_p11 = pneg %p942_p10 }
 0x23a   : > { %1074 = dma.done.wait (%p943_p11), %s846_s16, 128  }
 0x23b   : > { %1076 = vsyncadd (%p943_p11), %s846_s16, 4294967168  ;;  %p18_p12 = scmp.ge.s32.totalorder %s1170_s30, 4   ;;  %s1588_s24 = smov %s1083_s25 }
 0x23c   : > { %s1589_s25 = smov %s1087_s26  ;;  %s1590_s26 = smov %s1181_s10 }
 0x23d   : > { %s1591_s27 = smov %s1170_s30  ;;  %20 = sbr.rel (!%p18_p12) target bundleno = 4 (0x4), region = 96 }
 0x242   :  { %852 = vsyncpa [#allocation3], 1 }
 0x243   :  { %854 = vsyncpa [#allocation3 + $0x1], 1 }
 0x244   :  { %855 = vsyncpa [#allocation4], 1 }
 0x245   :  { %857 = vsyncpa [#allocation4 + $0x1], 1 }

</bundles_post_ra>
